<compile_context>
chip_gen: v7x
topology: tpu7x:2x2x1
jax: 0.10.0
libtpu: 0.0.40
codegen_flags: <defaults>
</compile_context>

<pallas_src>
import functools

import jax
import jax.numpy as jnp
from jax.experimental import pallas as pl
from jax.experimental.pallas import tpu as pltpu


FEATURE_DIMS = {"lift_dim": 64, "splat_dim": 64, "depth_dim": 64}  # StandardLSSAdapter
HIDDEN = 64
FEAT_W = FEATURE_DIMS["lift_dim"] + FEATURE_DIMS["splat_dim"] + FEATURE_DIMS["depth_dim"]  # 192
OUT_W = FEATURE_DIMS["lift_dim"] + FEATURE_DIMS["splat_dim"]                                # 128


# ----------------------------------------------------------------------------
# Fused Pallas kernel: 1x1 convs + both enhancement MLPs + residual
# ----------------------------------------------------------------------------
def _fused_pipeline_kernel(x_ref, bias_ref, wf_ref, bf_ref, w1_ref, w2_ref, out_ref):
    # x_ref   : (1, tm, Cin) bf16   flattened input pixels
    # bias_ref: (1, 1, 128)  f32    per-batch action bias (lift || splat)
    # wf_ref  : (Cin, 192)   bf16   fused 1x1-conv weights (lift|splat|depth)
    # bf_ref  : (1, 192)     f32    fused 1x1-conv biases
    # w1_ref  : (192, 128)   bf16   packed first MLP layer (both branches)
    # w2_ref  : (128, 128)   bf16   block-diagonal second MLP layer
    # out_ref : (1, tm, 128) f32    enhanced_lift || enhanced_splat
    feat = jnp.dot(x_ref[0], wf_ref[...], preferred_element_type=jnp.float32)
    feat = feat + bf_ref[...]                                    # (tm, 192)

    h = jnp.dot(feat.astype(jnp.bfloat16), w1_ref[...],
                preferred_element_type=jnp.float32)
    h = jnp.maximum(h + bias_ref[0], 0.0)                        # (tm, 128)

    y = jnp.dot(h.astype(jnp.bfloat16), w2_ref[...],
                preferred_element_type=jnp.float32)              # (tm, 128)
    out_ref[0] = (feat[:, :OUT_W] + y).astype(out_ref.dtype)     # residual, lane-dense store


def _pick_tile(n):
    # Largest row tile that divides N (cuts per-grid-step overhead; biggest lever
    # for this mem/launch-bound workload).
    for tm in (2048, 1024, 512, 256, 128, 64, 32, 16, 8):
        if tm <= n and n % tm == 0:
            return tm
    return n


def fused_hmm_pipeline(x_bf16, bias_packed, wf, bf, w1p, w2p):
    """(B, N, Cin) bf16 -> (B, N, 128) f32 = enhanced_lift || enhanced_splat."""
    B, N, Cin = x_bf16.shape
    tm = _pick_tile(N)
    return pl.pallas_call(
        _fused_pipeline_kernel,
        out_shape=jax.ShapeDtypeStruct((B, N, OUT_W), jnp.float32),
        grid_spec=pltpu.PrefetchScalarGridSpec(
            num_scalar_prefetch=0,
            grid=(B, N // tm),
            in_specs=[
                pl.BlockSpec((1, tm, Cin), lambda bi, i: (bi, i, 0)),
                pl.BlockSpec((1, 1, OUT_W), lambda bi, i: (bi, 0, 0)),
                pl.BlockSpec((Cin, FEAT_W), lambda bi, i: (0, 0)),
                pl.BlockSpec((1, FEAT_W), lambda bi, i: (0, 0)),
                pl.BlockSpec((FEAT_W, OUT_W), lambda bi, i: (0, 0)),
                pl.BlockSpec((OUT_W, OUT_W), lambda bi, i: (0, 0)),
            ],
            out_specs=pl.BlockSpec((1, tm, OUT_W), lambda bi, i: (bi, i, 0)),
        ),
        compiler_params=pltpu.CompilerParams(
            dimension_semantics=("parallel", "parallel"),
            vmem_limit_bytes=32 << 20,   # safe on v5e/v6e (128 MiB) and v7x (64 MiB)
        ),
    )(x_bf16, bias_packed, wf, bf, w1p, w2p)


# ----------------------------------------------------------------------------
# Parameters (same synthetic LSS + HMM-plugin weights as before) + packing
# ----------------------------------------------------------------------------
def init_params(key, in_ch):
    ks = jax.random.split(key, 12)
    lift_d, splat_d, depth_d = (FEATURE_DIMS["lift_dim"],
                                FEATURE_DIMS["splat_dim"],
                                FEATURE_DIMS["depth_dim"])
    s = 0.05
    return {
        # LSS "hooked" modules (1x1 convs)
        "w_lift":  jax.random.normal(ks[0], (in_ch, lift_d), jnp.float32) * s,
        "b_lift":  jnp.zeros((1, lift_d), jnp.float32),
        "w_splat": jax.random.normal(ks[1], (in_ch, splat_d), jnp.float32) * s,
        "b_splat": jnp.zeros((1, splat_d), jnp.float32),
        "w_depth": jax.random.normal(ks[2], (in_ch, depth_d), jnp.float32) * s,
        "b_depth": jnp.zeros((1, depth_d), jnp.float32),
        # HMM plugin: action projections (tiny, plain JAX glue)
        "wa_lift":  jax.random.normal(ks[3], (6, HIDDEN), jnp.float32) * s,
        "ba_lift":  jnp.zeros((HIDDEN,), jnp.float32),
        "wa_splat": jax.random.normal(ks[4], (6, HIDDEN), jnp.float32) * s,
        "ba_splat": jnp.zeros((HIDDEN,), jnp.float32),
        # HMM plugin: per-pixel residual MLPs
        "w1_lift":  jax.random.normal(ks[5], (lift_d + depth_d, HIDDEN), jnp.float32) * s,
        "w2_lift":  jax.random.normal(ks[6], (HIDDEN, lift_d), jnp.float32) * s,
        "w1_splat": jax.random.normal(ks[7], (splat_d, HIDDEN), jnp.float32) * s,
        "w2_splat": jax.random.normal(ks[8], (HIDDEN, splat_d), jnp.float32) * s,
    }


def pack_params(p):
    """Fuse the per-branch weights into the packed layout the kernel expects."""
    lift_d = FEATURE_DIMS["lift_dim"]
    # Fused 1x1 convs: (Cin, 192) / (1, 192)
    wf = jnp.concatenate([p["w_lift"], p["w_splat"], p["w_depth"]], axis=1)
    bf = jnp.concatenate([p["b_lift"], p["b_splat"], p["b_depth"]], axis=1)
    # Packed first MLP layer (192, 128): see header comment for the row layout.
    z = jnp.zeros((lift_d, HIDDEN), jnp.float32)
    w1p = jnp.concatenate([
        jnp.concatenate([p["w1_lift"][:lift_d], z], axis=1),   # lift rows  -> lift branch
        jnp.concatenate([z, p["w1_splat"]], axis=1),           # splat rows -> splat branch
        jnp.concatenate([p["w1_lift"][lift_d:], z], axis=1),   # depth rows -> lift branch
    ], axis=0)
    # Block-diagonal second MLP layer (128, 128).
    z2 = jnp.zeros((HIDDEN, lift_d), jnp.float32)
    w2p = jnp.concatenate([
        jnp.concatenate([p["w2_lift"], z2], axis=1),
        jnp.concatenate([z2, p["w2_splat"]], axis=1),
    ], axis=0)
    return {
        "wf": wf.astype(jnp.bfloat16),
        "bf": bf,
        "w1p": w1p.astype(jnp.bfloat16),
        "w2p": w2p.astype(jnp.bfloat16),
        "wa_lift": p["wa_lift"], "ba_lift": p["ba_lift"],
        "wa_splat": p["wa_splat"], "ba_splat": p["ba_splat"],
    }


# ----------------------------------------------------------------------------
# Jitted functional forward (extract_features + hmm_plugin, fully fused)
# ----------------------------------------------------------------------------
@jax.jit
def _forward_impl(packed, imgs, actions):
    B, Cin, H, W = imgs.shape
    N = H * W
    # NCHW -> (B, N, Cin), bf16 at the kernel boundary (v6e/v7x MXU native).
    x = jnp.transpose(imgs, (0, 2, 3, 1)).reshape(B, N, Cin).astype(jnp.bfloat16)

    # Action conditioning (tiny (B,6)x(6,64) matmuls — plain JAX glue).
    bias_lift = actions @ packed["wa_lift"] + packed["ba_lift"]     # (B, 64)
    bias_splat = actions @ packed["wa_splat"] + packed["ba_splat"]  # (B, 64)
    bias_packed = jnp.concatenate([bias_lift, bias_splat], axis=-1)[:, None, :]  # (B,1,128)

    out = fused_hmm_pipeline(x, bias_packed, packed["wf"], packed["bf"],
                             packed["w1p"], packed["w2p"])           # (B, N, 128)

    out = out.reshape(B, H, W, OUT_W)
    lift_d = FEATURE_DIMS["lift_dim"]
    enhanced_lift = jnp.transpose(out[..., :lift_d], (0, 3, 1, 2))   # NCHW, f32
    enhanced_splat = jnp.transpose(out[..., lift_d:], (0, 3, 1, 2))
    return {"enhanced_lift": enhanced_lift, "enhanced_splat": enhanced_splat}


# ----------------------------------------------------------------------------
# PlugAndPlayHMMWrapper
# ----------------------------------------------------------------------------
class PlugAndPlayHMMWrapper:
    def __init__(self, params):
        self.params = params
        self.packed = pack_params(params)
        self.attached = False
        self.model_type = None

    def attach_to_lss_model(self, model_type="standard_lss"):
        if model_type != "standard_lss":
            raise ValueError(f"Unsupported model type: {model_type}")
        self.model_type = model_type
        self.attached = True

    def _compute_ego_motion(self, rots, trans):
        # torch.randn(batch_size, 6) -> deterministic normal draw.
        # TODO(synk): matches torch.randn in distribution only, not per-call variability.
        B = rots.shape[0]
        return jax.random.normal(jax.random.PRNGKey(42), (B, 6), jnp.float32)

    def _extract_actions(self, *args):
        if len(args) >= 3:
            rots, trans = args[1], args[2]
            return self._compute_ego_motion(rots, trans)
        return jnp.zeros((1, 6), jnp.float32)

    def forward(self, *args):
        if not self.attached:
            raise RuntimeError("attach_to_lss_model() first")
        imgs = args[0]
        actions = self._extract_actions(*args)
        hmm_outputs = _forward_impl(self.packed, imgs, actions)
        # StandardLSSAdapter.inject_features is a no-op -> None.
        final_output = None
        return final_output, hmm_outputs

    __call__ = forward


# ----------------------------------------------------------------------------
if __name__ == "__main__":
    B, Cin, H, W = 2, 8, 16, 16

    key = jax.random.PRNGKey(0)
    k_img, k_rot, k_trans, k_param = jax.random.split(key, 4)
    imgs = jax.random.normal(k_img, (B, Cin, H, W), jnp.float32)   # NCHW like torch
    rots = jax.random.normal(k_rot, (B, 3, 3), jnp.float32)
    trans = jax.random.normal(k_trans, (B, 3), jnp.float32)

    params = init_params(k_param, Cin)
    wrapper = PlugAndPlayHMMWrapper(params)
    wrapper.attach_to_lss_model("standard_lss")

    final_output, hmm_outputs = wrapper(imgs, rots, trans)
    jax.block_until_ready(hmm_outputs["enhanced_lift"])
    jax.block_until_ready(hmm_outputs["enhanced_splat"])

    assert hmm_outputs["enhanced_lift"].shape == (B, 64, H, W)
    assert hmm_outputs["enhanced_splat"].shape == (B, 64, H, W)
    assert final_output is None
    print("KERNEL_OK")
</pallas_src>

<mosaic_0001>
module attributes {stable_mosaic.version = 11 : i64} {
  func.func @_fused_pipeline_kernel(%arg0: i32, %arg1: i32, %arg2: memref<1x256x8xbf16, #tpu.memory_space<vmem>>, %arg3: memref<1x1x128xf32, #tpu.memory_space<vmem>>, %arg4: memref<8x192xbf16, #tpu.memory_space<vmem>>, %arg5: memref<1x192xf32, #tpu.memory_space<vmem>>, %arg6: memref<192x128xbf16, #tpu.memory_space<vmem>>, %arg7: memref<128x128xbf16, #tpu.memory_space<vmem>>, %arg8: memref<1x256x128xf32, #tpu.memory_space<vmem>>) attributes {dimension_semantics = [#tpu.dimension_semantics<parallel>, #tpu.dimension_semantics<parallel>], iteration_bounds = array<i64: 2, 1>, scalar_prefetch = 0 : i64, scratch_operands = 0 : i64, tpu.core_type = #tpu.core_type<tc>, window_params = [{transform_indices = @transform_0, window_bounds = array<i64: 1, 256, 8>}, {transform_indices = @transform_1, window_bounds = array<i64: 1, 1, 128>}, {pipeline_mode = #tpu.pipeline_mode<synchronous>, transform_indices = @transform_2, window_bounds = array<i64: 8, 192>}, {pipeline_mode = #tpu.pipeline_mode<synchronous>, transform_indices = @transform_3, window_bounds = array<i64: 1, 192>}, {pipeline_mode = #tpu.pipeline_mode<synchronous>, transform_indices = @transform_4, window_bounds = array<i64: 192, 128>}, {pipeline_mode = #tpu.pipeline_mode<synchronous>, transform_indices = @transform_5, window_bounds = array<i64: 128, 128>}, {transform_indices = @transform_6, window_bounds = array<i64: 1, 256, 128>}]} {
    %c0 = arith.constant 0 : index
    %c0_0 = arith.constant 0 : index
    %c0_1 = arith.constant 0 : index
    %0 = vector.load %arg2[%c0, %c0_0, %c0_1] : memref<1x256x8xbf16, #tpu.memory_space<vmem>>, vector<1x256x8xbf16>
    %1 = vector.shape_cast %0 : vector<1x256x8xbf16> to vector<256x8xbf16>
    %c0_2 = arith.constant 0 : index
    %c0_3 = arith.constant 0 : index
    %2 = vector.load %arg4[%c0_2, %c0_3] : memref<8x192xbf16, #tpu.memory_space<vmem>>, vector<8x192xbf16>
    %cst = arith.constant dense<0.000000e+00> : vector<256x192xf32>
    %3 = tpu.matmul %1, %2, %cst {dimension_numbers = #tpu.dot_dimension_numbers<[1], [0], [0], [1], [0, 0, 1, 1], [], []>} : vector<256x8xbf16>, vector<8x192xbf16>, vector<256x192xf32> -> vector<256x192xf32>
    %c0_4 = arith.constant 0 : index
    %c0_5 = arith.constant 0 : index
    %4 = vector.load %arg5[%c0_4, %c0_5] : memref<1x192xf32, #tpu.memory_space<vmem>>, vector<1x192xf32>
    %5 = vector.broadcast %4 : vector<1x192xf32> to vector<256x192xf32>
    %6 = arith.addf %3, %5 : vector<256x192xf32>
    %7 = arith.truncf %6 : vector<256x192xf32> to vector<256x192xbf16>
    %c0_6 = arith.constant 0 : index
    %c0_7 = arith.constant 0 : index
    %8 = vector.load %arg6[%c0_6, %c0_7] : memref<192x128xbf16, #tpu.memory_space<vmem>>, vector<192x128xbf16>
    %cst_8 = arith.constant dense<0.000000e+00> : vector<256x128xf32>
    %9 = tpu.matmul %7, %8, %cst_8 {dimension_numbers = #tpu.dot_dimension_numbers<[1], [0], [0], [1], [0, 0, 1, 1], [], []>} : vector<256x192xbf16>, vector<192x128xbf16>, vector<256x128xf32> -> vector<256x128xf32>
    %c0_9 = arith.constant 0 : index
    %c0_10 = arith.constant 0 : index
    %c0_11 = arith.constant 0 : index
    %10 = vector.load %arg3[%c0_9, %c0_10, %c0_11] : memref<1x1x128xf32, #tpu.memory_space<vmem>>, vector<1x1x128xf32>
    %11 = vector.shape_cast %10 : vector<1x1x128xf32> to vector<1x128xf32>
    %12 = vector.broadcast %11 : vector<1x128xf32> to vector<256x128xf32>
    %13 = arith.addf %9, %12 : vector<256x128xf32>
    %cst_12 = arith.constant 0.000000e+00 : f32
    %14 = vector.broadcast %cst_12 : f32 to vector<256x128xf32>
    %15 = arith.maximumf %13, %14 : vector<256x128xf32>
    %16 = arith.truncf %15 : vector<256x128xf32> to vector<256x128xbf16>
    %c0_13 = arith.constant 0 : index
    %c0_14 = arith.constant 0 : index
    %17 = vector.load %arg7[%c0_13, %c0_14] : memref<128x128xbf16, #tpu.memory_space<vmem>>, vector<128x128xbf16>
    %cst_15 = arith.constant dense<0.000000e+00> : vector<256x128xf32>
    %18 = tpu.matmul %16, %17, %cst_15 {dimension_numbers = #tpu.dot_dimension_numbers<[1], [0], [0], [1], [0, 0, 1, 1], [], []>} : vector<256x128xbf16>, vector<128x128xbf16>, vector<256x128xf32> -> vector<256x128xf32>
    %19 = vector.extract_strided_slice %6 {offsets = [0, 0], sizes = [256, 128], strides = [1, 1]} : vector<256x192xf32> to vector<256x128xf32>
    %20 = arith.addf %19, %18 : vector<256x128xf32>
    %c0_16 = arith.constant 0 : index
    %c0_17 = arith.constant 0 : index
    %c0_18 = arith.constant 0 : index
    %21 = vector.load %arg8[%c0_16, %c0_17, %c0_18] : memref<1x256x128xf32, #tpu.memory_space<vmem>>, vector<1x256x128xf32>
    %22 = vector.shape_cast %21 : vector<1x256x128xf32> to vector<256x128xf32>
    %23 = vector.shape_cast %20 : vector<256x128xf32> to vector<1x256x128xf32>
    tpu.vector_store %arg8[%c0_16, %c0_17, %c0_18], %23 {strides = array<i32>} : memref<1x256x128xf32, #tpu.memory_space<vmem>>, vector<1x256x128xf32>,
    return
  }
  func.func @transform_0(%arg0: i32, %arg1: i32) -> (i32, i32, i32) {
    %c0_i32 = arith.constant 0 : i32
    %c0_i32_0 = arith.constant 0 : i32
    return %arg0, %arg1, %c0_i32 : i32, i32, i32
  }
  func.func @transform_1(%arg0: i32, %arg1: i32) -> (i32, i32, i32) {
    %c0_i32 = arith.constant 0 : i32
    %c0_i32_0 = arith.constant 0 : i32
    %c0_i32_1 = arith.constant 0 : i32
    return %arg0, %c0_i32, %c0_i32_0 : i32, i32, i32
  }
  func.func @transform_2(%arg0: i32, %arg1: i32) -> (i32, i32) {
    %c0_i32 = arith.constant 0 : i32
    %c0_i32_0 = arith.constant 0 : i32
    %c0_i32_1 = arith.constant 0 : i32
    return %c0_i32, %c0_i32_0 : i32, i32
  }
  func.func @transform_3(%arg0: i32, %arg1: i32) -> (i32, i32) {
    %c0_i32 = arith.constant 0 : i32
    %c0_i32_0 = arith.constant 0 : i32
    %c0_i32_1 = arith.constant 0 : i32
    return %c0_i32, %c0_i32_0 : i32, i32
  }
  func.func @transform_4(%arg0: i32, %arg1: i32) -> (i32, i32) {
    %c0_i32 = arith.constant 0 : i32
    %c0_i32_0 = arith.constant 0 : i32
    %c0_i32_1 = arith.constant 0 : i32
    return %c0_i32, %c0_i32_0 : i32, i32
  }
  func.func @transform_5(%arg0: i32, %arg1: i32) -> (i32, i32) {
    %c0_i32 = arith.constant 0 : i32
    %c0_i32_0 = arith.constant 0 : i32
    %c0_i32_1 = arith.constant 0 : i32
    return %c0_i32, %c0_i32_0 : i32, i32
  }
  func.func @transform_6(%arg0: i32, %arg1: i32) -> (i32, i32, i32) {
    %c0_i32 = arith.constant 0 : i32
    %c0_i32_0 = arith.constant 0 : i32
    return %arg0, %arg1, %c0_i32 : i32, i32, i32
  }
}

</mosaic_0001>

<bundles_post_ra>
// kernel: _forward_impl.1
= control target key start
LH: loop header
LB: loop body
LE: loop exit
PB: predicated region body
PF: predicated region fallthrough
CT: control target
= control target key end

     0   :  { %s1759_s21 = smov 0   ;;  %s1761_s22 = smov 0   ;;  %s2208_s0 = inlined_call_operand.vmem [shape: bf16[2,256,8], index: 0, kind: input, shape index: {}]   ;;  %s2209_s1 = inlined_call_operand.vmem [shape: f32[2,1,128], index: 1, kind: input, shape index: {}]   ;;  %s2210_s2 = inlined_call_operand.vmem [shape: bf16[8,192], index: 2, kind: input, shape index: {}]   ;;  %s2211_s3 = inlined_call_operand.vmem [shape: f32[1,192], index: 3, kind: input, shape index: {}]   ;;  %s2212_s4 = inlined_call_operand.vmem [shape: bf16[192,128], index: 4, kind: input, shape index: {}]   ;;  %s2213_s5 = inlined_call_operand.vmem [shape: bf16[128,128], index: 5, kind: input, shape index: {}]   ;;  %s2214_s6 = inlined_call_operand.vmem [shape: f32[2,256,128], index: 6, kind: output, shape index: {}]  }
   0x1   :  { %s1763_s23 = smov 0  }
   0x2 LB: > { %s28_s24 = sadd.s32 1, %s1717_s22  ;;  %p1467_p0 = scmp.ge.s32.totalorder %s1721_s23, 1  ;;  %s1721_s23 = sphi %s1763_s23, %s16_s23   ;;  %s1717_s22 = sphi %s1761_s22, %s2216_s22   ;;  %s1713_s21 = sphi %s1759_s21, %s2215_s21  }
   0x3   : > { %p30_p1 = scmp.ge.s32.totalorder %s28_s24, 2  ;;  %p241_p2 = scmp.lt.s32.totalorder %s1721_s23, 3 }
   0x5   : > { %s2218_s24 = smov (%p30_p1, %s28_s24), 0  ;;  %p242_p3 = pnand %p1467_p0, %p241_p2 }
   0x6   : > { %v338_v0 = vld [vmem:[%s2210_s2] sm:$0xff] (!%p242_p3)  ;;  %vm485_vm0 = vcmask (!%p242_p3), 1043456   ;;  %p283_p4 = scmp.lt.s32.totalorder (!%p242_p3), %s1713_s21, 1  ;;  %v1723_v4 = vmov (!%p242_p3), 0   ;;  %v1680_v5 = vld [vmem:[%s2212_s4 + $0x8] sm:$0xff] (!%p242_p3)   ;;  %vm436_vm1 = vcmask (!%p242_p3), 64512   ;;  %v341_v33 = vlaneseq (!%p242_p3) }
   0x7   : > { %245 = sbr.rel (%p242_p3) target bundleno = 796 (0x31c), region = 44  ;;  %v1679_v1 = vld [vmem:[%s2212_s4] sm:$0xff] (!%p242_p3)   ;;  %v1489_v2 = vcombine.high (!%p242_p3), %v338_v0, %v338_v0  ;;  %v1488_v3 = vcombine.low (!%p242_p3), %v338_v0, %v338_v0  ;;  %524 = vmatprep.mubr.bf16.mxu0 (!%p242_p3), %v1723_v4  ;;  %869 = vmatprep.subr.bf16.mxu1 (!%p242_p3), %v1723_v4  ;;  %v1681_v7 = vld [vmem:[%s2212_s4 + $0x10] sm:$0xff] (!%p242_p3)   ;;  %v1682_v9 = vld [vmem:[%s2212_s4 + $0x18] sm:$0xff] (!%p242_p3)   ;;  %vm820_vm2 = vcmask (!%p242_p3), 523264  }
   0x8   : > { %870 = vmatpush1.bf16.msra.mxu1 (!%p242_p3), %v1679_v1  ;;  %v1683_v11 = vld [vmem:[%s2212_s4 + $0x20] sm:$0xff] (!%p242_p3)   ;;  %v1684_v13 = vld [vmem:[%s2212_s4 + $0x28] sm:$0xff] (!%p242_p3)   ;;  %v1685_v14 = vld [vmem:[%s2212_s4 + $0x30] sm:$0xff] (!%p242_p3)   ;;  %v342_v34 = vshrl.u32 (!%p242_p3), %v341_v33, 7 }
   0x9   : > { %1490 = vmatprep.subr.msk.bf16.mxu0 (!%p242_p3), %vm485_vm0, %v1489_v2  ;;  %v487_v6 = vsel (!%p242_p3), %vm485_vm0, %v1488_v3, 0  ;;  %871 = vmatprep.subr.bf16.mxu1 (!%p242_p3), %v1723_v4  ;;  %v1686_v16 = vld [vmem:[%s2212_s4 + $0x38] sm:$0xff] (!%p242_p3)   ;;  %v1687_v17 = vld [vmem:[%s2212_s4 + $0x40] sm:$0xff] (!%p242_p3)   ;;  %v1688_v19 = vld [vmem:[%s2212_s4 + $0x48] sm:$0xff] (!%p242_p3)  }
   0xa   : > { %493 = vmatpush1.bf16.msra.mxu0 (!%p242_p3), %v487_v6  ;;  %v1689_v26 = vld [vmem:[%s2212_s4 + $0x50] sm:$0xff] (!%p242_p3)   ;;  %v1690_v28 = vld [vmem:[%s2212_s4 + $0x58] sm:$0xff] (!%p242_p3)   ;;  %v347_v35 = vsub.s32 (!%p242_p3), 1, %v342_v34  ;;  %v339_v36 = vld [vmem:[%s2211_s3] sm:$0x3] (!%p242_p3)  ;;  %v343_v37 = vsub.s32 (!%p242_p3), 0, %v342_v34 }
   0xb   : > { %v1691_v42 = vld [vmem:[%s2213_s5] sm:$0xff] (!%p242_p3)   ;;  %v1692_v43 = vld [vmem:[%s2213_s5 + $0x8] sm:$0xff] (!%p242_p3)   ;;  %v1693_v50 = vld [vmem:[%s2213_s5 + $0x10] sm:$0xff] (!%p242_p3)  }
   0xc   : > { %872 = vmatpush1.bf16.msra.mxu1 (!%p242_p3), %v1680_v5  ;;  %v1887_v39 = vrot.slane (!%p242_p3), %v339_v36, %v347_v35  ;;  %v1889_v40 = vrot.slane (!%p242_p3), %v339_v36, %v343_v37  ;;  %1572 = vmatprep.subr.bf16.mxu0 (!%p242_p3), %v1691_v42  ;;  %v1694_v55 = vld [vmem:[%s2213_s5 + $0x18] sm:$0xff] (!%p242_p3)  }
   0xd   : > { %873 = vmatprep.subr.bf16.mxu1 (!%p242_p3), %v1723_v4 }
   0xe   : > { %s2220_s21 = smov (!%p283_p4, %s1713_s21), 1 }
   0xf   : > { %s1546_s7 = sshll.u32 %s2220_s21, 7  ;;  %s294_s12 = scalar_lea.vmem %s2209_s1, %s2220_s21 }
  0x10   : > { %s1795_s10 = scalar_lea.vmem %s2208_s0, %s1546_s7  ;;  %874 = vmatpush1.bf16.msra.mxu1 %v1681_v7  ;;  %s1547_s13 = sshll.u32 %s2220_s21, 8 }
  0x11   : > { %v1663_v8 = vld [vmem:[%s1795_s10] sm:$0xff]   ;;  %875 = vmatprep.subr.bf16.mxu1 %v1723_v4  ;;  %v1664_v10 = vld [vmem:[%s1795_s10 + $0x8] sm:$0xff]   ;;  %v1665_v12 = vld [vmem:[%s1795_s10 + $0x10] sm:$0xff]  }
  0x12   : > { %1491 = vmatmul.mubr.msk.bf16.vlgmr.msra.gmra.mrb[0].mxu0 %vm436_vm1, %v1663_v8  ;;  %v1666_v15 = vld [vmem:[%s1795_s10 + $0x18] sm:$0xff]   ;;  %v1667_v18 = vld [vmem:[%s1795_s10 + $0x20] sm:$0xff]   ;;  %v1668_v20 = vld [vmem:[%s1795_s10 + $0x28] sm:$0xff]  }
  0x13   : > { %534 = vmatprep.mubr.bf16.mxu0 %v1723_v4  ;;  %v1669_v21 = vld [vmem:[%s1795_s10 + $0x30] sm:$0xff]   ;;  %v1670_v22 = vld [vmem:[%s1795_s10 + $0x38] sm:$0xff]   ;;  %v1671_v23 = vld [vmem:[%s1795_s10 + $0x40] sm:$0xff]   ;;  %1573 = vmatpush3.bf16.msra.mxu0 %v1691_v42 }
  0x14   : > { %876 = vmatpush1.bf16.msra.mxu1 %v1682_v9  ;;  %v1672_v24 = vld [vmem:[%s1795_s10 + $0x48] sm:$0xff]   ;;  %v1673_v25 = vld [vmem:[%s1795_s10 + $0x50] sm:$0xff]   ;;  %v1674_v27 = vld [vmem:[%s1795_s10 + $0x58] sm:$0xff]   ;;  %1574 = vmatprep.subr.bf16.mxu0 %v1692_v43 }
  0x15   : > { %877 = vmatprep.subr.bf16.mxu1 %v1723_v4  ;;  %v1675_v29 = vld [vmem:[%s1795_s10 + $0x60] sm:$0xff]   ;;  %v1676_v30 = vld [vmem:[%s1795_s10 + $0x68] sm:$0xff]   ;;  %v1677_v31 = vld [vmem:[%s1795_s10 + $0x70] sm:$0xff]  }
  0x16   : > { %v1678_v32 = vld [vmem:[%s1795_s10 + $0x78] sm:$0xff]   ;;  %s2133_s10 = scalar_lea.vmem %s2214_s6, %s1547_s13 }
  0x17   : > { %1575 = vmatpush3.bf16.msra.mxu0 %v1692_v43 }
  0x18   : > { %878 = vmatpush1.bf16.msra.mxu1 %v1683_v11  ;;  %1576 = vmatprep.subr.bf16.mxu0 %v1693_v50 }
  0x19   : > { %879 = vmatprep.subr.bf16.mxu1 %v1723_v4 }
  0x1a   : > { %1492 = vmatmul.mubr.msk.bf16.gmra.mrb[4].mxu0 %vm436_vm1, %v1664_v10 }
  0x1b   : > { %544 = vmatprep.mubr.bf16.mxu0 %v1723_v4  ;;  %1577 = vmatpush3.bf16.msra.mxu0 %v1693_v50 }
  0x1c   : > { %880 = vmatpush1.bf16.msra.mxu1 %v1684_v13  ;;  %1578 = vmatprep.subr.bf16.mxu0 %v1694_v55 }
  0x1d   : > { %881 = vmatprep.subr.bf16.mxu1 %v1723_v4 }
  0x1f   : > { %1579 = vmatpush3.bf16.msra.mxu0 %v1694_v55 }
  0x20   : > { %882 = vmatpush1.bf16.msra.mxu1 %v1685_v14 }
  0x21   : > { %883 = vmatprep.subr.bf16.mxu1 %v1723_v4 }
  0x22   : > { %1493 = vmatmul.mubr.msk.bf16.gmra.mrb[8].mxu0 %vm436_vm1, %v1665_v12 }
  0x23   : > { %554 = vmatprep.mubr.bf16.mxu0 %v1723_v4 }
  0x24   : > { %884 = vmatpush1.bf16.msra.mxu1 %v1686_v16 }
  0x25   : > { %885 = vmatprep.subr.bf16.mxu1 %v1723_v4 }
  0x28   : > { %886 = vmatpush1.bf16.msra.mxu1 %v1687_v17 }
  0x29   : > { %887 = vmatprep.subr.bf16.mxu1 %v1723_v4 }
  0x2a   : > { %1494 = vmatmul.mubr.msk.bf16.gmra.mrb[12].mxu0 %vm436_vm1, %v1666_v15 }
  0x2b   : > { %564 = vmatprep.mubr.bf16.mxu0 %v1723_v4 }
  0x2c   : > { %888 = vmatpush1.bf16.msra.mxu1 %v1688_v19 }
  0x2d   : > { %889 = vmatprep.subr.bf16.mxu1 %v1723_v4 }
  0x30   : > { %890 = vmatpush1.bf16.msra.mxu1 %v1689_v26 }
  0x31   : > { %891 = vmatprep.subr.bf16.mxu1 %v1723_v4 }
  0x32   : > { %1495 = vmatmul.mubr.msk.bf16.gmra.mrb[16].mxu0 %vm436_vm1, %v1667_v18 }
  0x33   : > { %574 = vmatprep.mubr.bf16.mxu0 %v1723_v4 }
  0x34   : > { %892 = vmatpush1.bf16.msra.mxu1 %v1690_v28 }
  0x35   : > { %1620 = vmatprep.subr.bf16.mxu1 %v1691_v42 }
  0x3a   : > { %1496 = vmatmul.mubr.msk.bf16.gmra.mrb[20].mxu0 %vm436_vm1, %v1668_v20 }
  0x3b   : > { %584 = vmatprep.mubr.bf16.mxu0 %v1723_v4 }
  0x42   : > { %1497 = vmatmul.mubr.msk.bf16.gmra.mrb[24].mxu0 %vm436_vm1, %v1669_v21 }
  0x43   : > { %594 = vmatprep.mubr.bf16.mxu0 %v1723_v4 }
  0x4a   : > { %1498 = vmatmul.mubr.msk.bf16.gmra.mrb[28].mxu0 %vm436_vm1, %v1670_v22 }
  0x4b   : > { %604 = vmatprep.mubr.bf16.mxu0 %v1723_v4 }
  0x52   : > { %1499 = vmatmul.mubr.msk.bf16.gmra.mrb[32].mxu0 %vm436_vm1, %v1671_v23 }
  0x53   : > { %614 = vmatprep.mubr.bf16.mxu0 %v1723_v4 }
  0x5a   : > { %1500 = vmatmul.mubr.msk.bf16.gmra.mrb[36].mxu0 %vm436_vm1, %v1672_v24 }
  0x5b   : > { %624 = vmatprep.mubr.bf16.mxu0 %v1723_v4 }
  0x62   : > { %1501 = vmatmul.mubr.msk.bf16.gmra.mrb[40].mxu0 %vm436_vm1, %v1673_v25 }
  0x63   : > { %634 = vmatprep.mubr.bf16.mxu0 %v1723_v4 }
  0x6a   : > { %1502 = vmatmul.mubr.msk.bf16.gmra.mrb[44].mxu0 %vm436_vm1, %v1674_v27 }
  0x6b   : > { %644 = vmatprep.mubr.bf16.mxu0 %v1723_v4 }
  0x72   : > { %1503 = vmatmul.mubr.msk.bf16.gmra.mrb[48].mxu0 %vm436_vm1, %v1675_v29 }
  0x73   : > { %654 = vmatprep.mubr.bf16.mxu0 %v1723_v4 }
  0x7a   : > { %1504 = vmatmul.mubr.msk.bf16.gmra.mrb[52].mxu0 %vm436_vm1, %v1676_v30 }
  0x7b   : > { %664 = vmatprep.mubr.bf16.mxu0 %v1723_v4 }
  0x82   : > { %1505 = vmatmul.mubr.msk.bf16.gmra.mrb[56].mxu0 %vm436_vm1, %v1677_v31 }
  0x83   : > { %674 = vmatprep.mubr.bf16.mxu0 %v1723_v4 }
  0x8a   : > { %1506 = vmatmul.mubr.msk.bf16.gmra.mrb[60].mxu0 %vm436_vm1, %v1678_v32 }
  0xe5   : > { %v526_v38 = vpop.f32.mrb[0].mxu0 }
  0xe6   : > { %v528_v41 = vpop.f32.mrb[1].mxu0  ;;  %v1903_v49 = vadd.f32 %v526_v38, %v1889_v40 }
  0xe7   : > { %v530_v44 = vpop.f32.mrb[2].mxu0  ;;  %v529_v47 = vadd.f32 %v528_v41, %v1887_v39 }
  0xe8   : > { %v1898_v45 = vadd.f32 %v530_v44, %v1889_v40  ;;  %v532_v46 = vpop.f32.mrb[3].mxu0 }
  0xe9   : > { %v533_v48 = vadd.f32 %v532_v46, %v1887_v39 }
  0xea   : > { %v685_v52 = vpack.c.bf16 %v1898_v45, %v1903_v49 }
  0xeb   : > { %v686_v51 = vpack.c.bf16 %v533_v48, %v529_v47 }
  0xed   : > { %v536_v53 = vpop.f32.mrb[4].mxu0  ;;  %1520 = vmatprep.mubr.msk.bf16.mxu1 %vm820_vm2, %v686_v51 }
  0xee   : > { %v538_v54 = vpop.f32.mrb[5].mxu0  ;;  %902 = vmatmul.mubr.bf16.vlgmr.msra.gmra.mrb[0].mxu1 %v685_v52  ;;  %v1920_v61 = vadd.f32 %v536_v53, %v1889_v40 }
  0xef   : > { %v540_v56 = vpop.f32.mrb[6].mxu0  ;;  %1628 = vmatpush3.bf16.msra.mxu1 %v1691_v42  ;;  %v539_v59 = vadd.f32 %v538_v54, %v1887_v39 }
  0xf0   : > { %v1915_v57 = vadd.f32 %v540_v56, %v1889_v40  ;;  %v542_v58 = vpop.f32.mrb[7].mxu0  ;;  %1621 = vmatprep.subr.bf16.mxu1 %v1692_v43 }
  0xf1   : > { %v543_v60 = vadd.f32 %v542_v58, %v1887_v39 }
  0xf2   : > { %v687_v63 = vpack.c.bf16 %v1915_v57, %v1920_v61 }
  0xf3   : > { %v688_v62 = vpack.c.bf16 %v543_v60, %v539_v59  ;;  %1629 = vmatpush3.bf16.msra.mxu1 %v1692_v43 }
  0xf4   : > { %1622 = vmatprep.subr.bf16.mxu1 %v1693_v50 }
  0xf5   : > { %v546_v0 = vpop.f32.mrb[8].mxu0  ;;  %1521 = vmatprep.mubr.msk.bf16.mxu1 %vm820_vm2, %v688_v62 }
  0xf6   : > { %v548_v1 = vpop.f32.mrb[9].mxu0  ;;  %910 = vmatmul.mubr.bf16.gmra.mrb[4].mxu1 %v687_v63  ;;  %v1931_v7 = vadd.f32 %v546_v0, %v1889_v40 }
  0xf7   : > { %v550_v2 = vpop.f32.mrb[10].mxu0  ;;  %1630 = vmatpush3.bf16.msra.mxu1 %v1693_v50  ;;  %v549_v5 = vadd.f32 %v548_v1, %v1887_v39 }
  0xf8   : > { %v1926_v3 = vadd.f32 %v550_v2, %v1889_v40  ;;  %v552_v4 = vpop.f32.mrb[11].mxu0  ;;  %1623 = vmatprep.subr.bf16.mxu1 %v1694_v55 }
  0xf9   : > { %v553_v6 = vadd.f32 %v552_v4, %v1887_v39 }
  0xfa   : > { %v689_v9 = vpack.c.bf16 %v1926_v3, %v1931_v7 }
  0xfb   : > { %v690_v8 = vpack.c.bf16 %v553_v6, %v549_v5  ;;  %1631 = vmatpush3.bf16.msra.mxu1 %v1694_v55 }
  0xfd   : > { %v556_v10 = vpop.f32.mrb[12].mxu0  ;;  %1522 = vmatprep.mubr.msk.bf16.mxu1 %vm820_vm2, %v690_v8 }
  0xfe   : > { %v558_v11 = vpop.f32.mrb[13].mxu0  ;;  %918 = vmatmul.mubr.bf16.gmra.mrb[8].mxu1 %v689_v9  ;;  %v1942_v17 = vadd.f32 %v556_v10, %v1889_v40 }
  0xff   : > { %v560_v12 = vpop.f32.mrb[14].mxu0  ;;  %v559_v15 = vadd.f32 %v558_v11, %v1887_v39 }
 0x100   : > { %v1937_v13 = vadd.f32 %v560_v12, %v1889_v40  ;;  %v562_v14 = vpop.f32.mrb[15].mxu0 }
 0x101   : > { %v563_v16 = vadd.f32 %v562_v14, %v1887_v39 }
 0x102   : > { %v691_v19 = vpack.c.bf16 %v1937_v13, %v1942_v17 }
 0x103   : > { %v692_v18 = vpack.c.bf16 %v563_v16, %v559_v15 }
 0x105   : > { %v566_v20 = vpop.f32.mrb[16].mxu0  ;;  %1523 = vmatprep.mubr.msk.bf16.mxu1 %vm820_vm2, %v692_v18 }
 0x106   : > { %v568_v21 = vpop.f32.mrb[17].mxu0  ;;  %926 = vmatmul.mubr.bf16.gmra.mrb[12].mxu1 %v691_v19  ;;  %v1953_v27 = vadd.f32 %v566_v20, %v1889_v40 }
 0x107   : > { %v570_v22 = vpop.f32.mrb[18].mxu0  ;;  %v569_v25 = vadd.f32 %v568_v21, %v1887_v39 }
 0x108   : > { %v1948_v23 = vadd.f32 %v570_v22, %v1889_v40  ;;  %v572_v24 = vpop.f32.mrb[19].mxu0 }
 0x109   : > { %v573_v26 = vadd.f32 %v572_v24, %v1887_v39 }
 0x10a   : > { %v693_v29 = vpack.c.bf16 %v1948_v23, %v1953_v27 }
 0x10b   : > { %v694_v28 = vpack.c.bf16 %v573_v26, %v569_v25 }
 0x10d   : > { %v576_v30 = vpop.f32.mrb[20].mxu0  ;;  %1524 = vmatprep.mubr.msk.bf16.mxu1 %vm820_vm2, %v694_v28 }
 0x10e   : > { %v578_v31 = vpop.f32.mrb[21].mxu0  ;;  %934 = vmatmul.mubr.bf16.gmra.mrb[16].mxu1 %v693_v29  ;;  %v1964_v37 = vadd.f32 %v576_v30, %v1889_v40 }
 0x10f   : > { %v580_v32 = vpop.f32.mrb[22].mxu0  ;;  %v579_v35 = vadd.f32 %v578_v31, %v1887_v39 }
 0x110   : > { %v1959_v33 = vadd.f32 %v580_v32, %v1889_v40  ;;  %v582_v34 = vpop.f32.mrb[23].mxu0 }
 0x111   : > { %v583_v36 = vadd.f32 %v582_v34, %v1887_v39 }
 0x112   : > { %v695_v41 = vpack.c.bf16 %v1959_v33, %v1964_v37 }
 0x113   : > { %v696_v38 = vpack.c.bf16 %v583_v36, %v579_v35 }
 0x115   : > { %v586_v42 = vpop.f32.mrb[24].mxu0  ;;  %1525 = vmatprep.mubr.msk.bf16.mxu1 %vm820_vm2, %v696_v38 }
 0x116   : > { %v588_v43 = vpop.f32.mrb[25].mxu0  ;;  %942 = vmatmul.mubr.bf16.gmra.mrb[20].mxu1 %v695_v41  ;;  %v1975_v51 = vadd.f32 %v586_v42, %v1889_v40 }
 0x117   : > { %v590_v44 = vpop.f32.mrb[26].mxu0  ;;  %v589_v48 = vadd.f32 %v588_v43, %v1887_v39 }
 0x118   : > { %v1970_v46 = vadd.f32 %v590_v44, %v1889_v40  ;;  %v592_v47 = vpop.f32.mrb[27].mxu0 }
 0x119   : > { %v593_v50 = vadd.f32 %v592_v47, %v1887_v39 }
 0x11a   : > { %v697_v53 = vpack.c.bf16 %v1970_v46, %v1975_v51 }
 0x11b   : > { %v698_v52 = vpack.c.bf16 %v593_v50, %v589_v48  ;;  %v1695_v50 = vld [vmem:[%s2213_s5 + $0x20] sm:$0xff]  }
 0x11c   : > { %1580 = vmatprep.subr.bf16.mxu0 %v1695_v50  ;;  %1624 = vmatprep.subr.bf16.mxu1 %v1695_v50 }
 0x11d   : > { %v596_v54 = vpop.f32.mrb[28].mxu0  ;;  %1526 = vmatprep.mubr.msk.bf16.mxu1 %vm820_vm2, %v698_v52  ;;  %1581 = vmatpush3.bf16.msra.mxu0 %v1695_v50 }
 0x11e   : > { %v598_v55 = vpop.f32.mrb[29].mxu0  ;;  %950 = vmatmul.mubr.bf16.gmra.mrb[24].mxu1 %v697_v53  ;;  %v1986_v63 = vadd.f32 %v596_v54, %v1889_v40 }
 0x11f   : > { %v600_v56 = vpop.f32.mrb[30].mxu0  ;;  %v599_v60 = vadd.f32 %v598_v55, %v1887_v39  ;;  %1632 = vmatpush3.bf16.msra.mxu1 %v1695_v50 }
 0x120   : > { %v1981_v58 = vadd.f32 %v600_v56, %v1889_v40  ;;  %v602_v59 = vpop.f32.mrb[31].mxu0 }
 0x121   : > { %v603_v62 = vadd.f32 %v602_v59, %v1887_v39  ;;  %v1696_v59 = vld [vmem:[%s2213_s5 + $0x28] sm:$0xff]  }
 0x122   : > { %v699_v1 = vpack.c.bf16 %v1981_v58, %v1986_v63  ;;  %1582 = vmatprep.subr.bf16.mxu0 %v1696_v59  ;;  %1625 = vmatprep.subr.bf16.mxu1 %v1696_v59 }
 0x123   : > { %v700_v0 = vpack.c.bf16 %v603_v62, %v599_v60  ;;  %1583 = vmatpush3.bf16.msra.mxu0 %v1696_v59  ;;  %1633 = vmatpush3.bf16.msra.mxu1 %v1696_v59 }
 0x125   : > { %v606_v2 = vpop.f32.mrb[32].mxu0  ;;  %1527 = vmatprep.mubr.msk.bf16.mxu1 %vm820_vm2, %v700_v0 }
 0x126   : > { %v608_v4 = vpop.f32.mrb[33].mxu0  ;;  %958 = vmatmul.mubr.bf16.gmra.mrb[28].mxu1 %v699_v1  ;;  %v1997_v11 = vadd.f32 %v606_v2, %v1889_v40 }
 0x127   : > { %v610_v5 = vpop.f32.mrb[34].mxu0  ;;  %v609_v9 = vadd.f32 %v608_v4, %v1887_v39  ;;  %v1697_v4 = vld [vmem:[%s2213_s5 + $0x30] sm:$0xff]  }
 0x128   : > { %v1992_v6 = vadd.f32 %v610_v5, %v1889_v40  ;;  %v612_v8 = vpop.f32.mrb[35].mxu0  ;;  %1584 = vmatprep.subr.bf16.mxu0 %v1697_v4  ;;  %1626 = vmatprep.subr.bf16.mxu1 %v1697_v4 }
 0x129   : > { %v613_v10 = vadd.f32 %v612_v8, %v1887_v39  ;;  %1585 = vmatpush3.bf16.msra.mxu0 %v1697_v4  ;;  %1634 = vmatpush3.bf16.msra.mxu1 %v1697_v4  ;;  %v2095_v4 = vld [vmem:[%s294_s12] ss:$0 sm:$0xff] }
 0x12a   : > { %v701_v14 = vpack.c.bf16 %v1992_v6, %v1997_v11 }
 0x12b   : > { %v702_v12 = vpack.c.bf16 %v613_v10, %v609_v9 }
 0x12d   : > { %v616_v15 = vpop.f32.mrb[36].mxu0  ;;  %1528 = vmatprep.mubr.msk.bf16.mxu1 %vm820_vm2, %v702_v12 }
 0x12e   : > { %v618_v16 = vpop.f32.mrb[37].mxu0  ;;  %966 = vmatmul.mubr.bf16.gmra.mrb[32].mxu1 %v701_v14  ;;  %v2008_v24 = vadd.f32 %v616_v15, %v1889_v40  ;;  %v1698_v14 = vld [vmem:[%s2213_s5 + $0x38] sm:$0xff]  }
 0x12f   : > { %v620_v18 = vpop.f32.mrb[38].mxu0  ;;  %v619_v21 = vadd.f32 %v618_v16, %v1887_v39  ;;  %1586 = vmatprep.subr.bf16.mxu0 %v1698_v14  ;;  %1627 = vmatprep.subr.bf16.mxu1 %v1698_v14 }
 0x130   : > { %v2003_v19 = vadd.f32 %v620_v18, %v1889_v40  ;;  %v622_v20 = vpop.f32.mrb[39].mxu0  ;;  %1587 = vmatpush3.bf16.msra.mxu0 %v1698_v14  ;;  %1635 = vmatpush3.bf16.msra.mxu1 %v1698_v14 }
 0x131   : > { %v623_v22 = vadd.f32 %v622_v20, %v1887_v39 }
 0x132   : > { %v703_v26 = vpack.c.bf16 %v2003_v19, %v2008_v24 }
 0x133   : > { %v704_v25 = vpack.c.bf16 %v623_v22, %v619_v21 }
 0x135   : > { %v626_v28 = vpop.f32.mrb[40].mxu0  ;;  %1529 = vmatprep.mubr.msk.bf16.mxu1 %vm820_vm2, %v704_v25 }
 0x136   : > { %v628_v29 = vpop.f32.mrb[41].mxu0  ;;  %974 = vmatmul.mubr.bf16.gmra.mrb[36].mxu1 %v703_v26  ;;  %v2019_v36 = vadd.f32 %v626_v28, %v1889_v40 }
 0x137   : > { %v630_v30 = vpop.f32.mrb[42].mxu0  ;;  %v629_v34 = vadd.f32 %v628_v29, %v1887_v39 }
 0x138   : > { %v2014_v31 = vadd.f32 %v630_v30, %v1889_v40  ;;  %v632_v32 = vpop.f32.mrb[43].mxu0 }
 0x139   : > { %v633_v35 = vadd.f32 %v632_v32, %v1887_v39 }
 0x13a   : > { %v705_v41 = vpack.c.bf16 %v2014_v31, %v2019_v36 }
 0x13b   : > { %v706_v38 = vpack.c.bf16 %v633_v35, %v629_v34 }
 0x13d   : > { %v636_v42 = vpop.f32.mrb[44].mxu0  ;;  %1530 = vmatprep.mubr.msk.bf16.mxu1 %vm820_vm2, %v706_v38 }
 0x13e   : > { %v638_v43 = vpop.f32.mrb[45].mxu0  ;;  %982 = vmatmul.mubr.bf16.gmra.mrb[40].mxu1 %v705_v41  ;;  %v2033_v54 = vadd.f32 %v636_v42, %v1889_v40 }
 0x13f   : > { %v640_v44 = vpop.f32.mrb[46].mxu0  ;;  %v639_v52 = vadd.f32 %v638_v43, %v1887_v39 }
 0x140   : > { %v2025_v47 = vadd.f32 %v640_v44, %v1889_v40  ;;  %v642_v48 = vpop.f32.mrb[47].mxu0 }
 0x141   : > { %v643_v53 = vadd.f32 %v642_v48, %v1887_v39 }
 0x142   : > { %v707_v56 = vpack.c.bf16 %v2025_v47, %v2033_v54 }
 0x143   : > { %v708_v55 = vpack.c.bf16 %v643_v53, %v639_v52 }
 0x145   : > { %v646_v60 = vpop.f32.mrb[48].mxu0  ;;  %1531 = vmatprep.mubr.msk.bf16.mxu1 %vm820_vm2, %v708_v55 }
 0x146   : > { %v648_v62 = vpop.f32.mrb[49].mxu0  ;;  %990 = vmatmul.mubr.bf16.gmra.mrb[44].mxu1 %v707_v56  ;;  %v2050_v9 = vadd.f32 %v646_v60, %v1889_v40 }
 0x147   : > { %v650_v0 = vpop.f32.mrb[50].mxu0  ;;  %v649_v5 = vadd.f32 %v648_v62, %v1887_v39 }
 0x148   : > { %v2042_v1 = vadd.f32 %v650_v0, %v1889_v40  ;;  %v652_v2 = vpop.f32.mrb[51].mxu0 }
 0x149   : > { %v653_v8 = vadd.f32 %v652_v2, %v1887_v39 }
 0x14a   : > { %v709_v12 = vpack.c.bf16 %v2042_v1, %v2050_v9 }
 0x14b   : > { %v710_v10 = vpack.c.bf16 %v653_v8, %v649_v5 }
 0x14d   : > { %v656_v15 = vpop.f32.mrb[52].mxu0  ;;  %1532 = vmatprep.mubr.msk.bf16.mxu1 %vm820_vm2, %v710_v10 }
 0x14e   : > { %v658_v16 = vpop.f32.mrb[53].mxu0  ;;  %998 = vmatmul.mubr.bf16.gmra.mrb[48].mxu1 %v709_v12  ;;  %v2064_v26 = vadd.f32 %v656_v15, %v1889_v40 }
 0x14f   : > { %v660_v18 = vpop.f32.mrb[54].mxu0  ;;  %v659_v22 = vadd.f32 %v658_v16, %v1887_v39 }
 0x150   : > { %v2059_v20 = vadd.f32 %v660_v18, %v1889_v40  ;;  %v662_v21 = vpop.f32.mrb[55].mxu0 }
 0x151   : > { %v663_v25 = vadd.f32 %v662_v21, %v1887_v39 }
 0x152   : > { %v711_v29 = vpack.c.bf16 %v2059_v20, %v2064_v26 }
 0x153   : > { %v712_v28 = vpack.c.bf16 %v663_v25, %v659_v22 }
 0x155   : > { %v666_v30 = vpop.f32.mrb[56].mxu0  ;;  %1533 = vmatprep.mubr.msk.bf16.mxu1 %vm820_vm2, %v712_v28 }
 0x156   : > { %v668_v32 = vpop.f32.mrb[57].mxu0  ;;  %1006 = vmatmul.mubr.bf16.gmra.mrb[52].mxu1 %v711_v29  ;;  %v2075_v43 = vadd.f32 %v666_v30, %v1889_v40 }
 0x157   : > { %v670_v34 = vpop.f32.mrb[58].mxu0  ;;  %v669_v41 = vadd.f32 %v668_v32, %v1887_v39 }
 0x158   : > { %v2070_v35 = vadd.f32 %v670_v34, %v1889_v40  ;;  %v672_v38 = vpop.f32.mrb[59].mxu0 }
 0x159   : > { %v673_v42 = vadd.f32 %v672_v38, %v1887_v39 }
 0x15a   : > { %v713_v48 = vpack.c.bf16 %v2070_v35, %v2075_v43 }
 0x15b   : > { %v714_v44 = vpack.c.bf16 %v673_v42, %v669_v41 }
 0x15d   : > { %v676_v50 = vpop.f32.mrb[60].mxu0  ;;  %1534 = vmatprep.mubr.msk.bf16.mxu1 %vm820_vm2, %v714_v44 }
 0x15e   : > { %v678_v52 = vpop.f32.mrb[61].mxu0  ;;  %1014 = vmatmul.mubr.bf16.gmra.mrb[56].mxu1 %v713_v48  ;;  %v2086_v62 = vadd.f32 %v676_v50, %v1889_v40 }
 0x15f   : > { %v680_v53 = vpop.f32.mrb[62].mxu0  ;;  %v679_v59 = vadd.f32 %v678_v52, %v1887_v39 }
 0x160   : > { %v2081_v55 = vadd.f32 %v680_v53, %v1889_v40  ;;  %v682_v56 = vpop.f32.mrb[63].mxu0 }
 0x161   : > { %v683_v60 = vadd.f32 %v682_v56, %v1887_v39 }
 0x162   : > { %v715_v2 = vpack.c.bf16 %v2081_v55, %v2086_v62 }
 0x163   : > { %v716_v0 = vpack.c.bf16 %v683_v60, %v679_v59 }
 0x165   : > { %1535 = vmatprep.mubr.msk.bf16.mxu1 %vm820_vm2, %v716_v0 }
 0x166   : > { %1022 = vmatmul.mubr.bf16.gmra.mrb[60].mxu1 %v715_v2 }
 0x1c1   : > { %v903_v5 = vpop.f32.mrb[0].mxu1 }
 0x1c2   : > { %v904_v8 = vadd.f32 %v2095_v4, %v903_v5  ;;  %v905_v39 = vpop.f32.mrb[1].mxu1 }
 0x1c3   : > { %v906_v10 = vpop.f32.mrb[2].mxu1 }
 0x1c4   : > { %v907_v40 = vadd.f32 %v2095_v4, %v906_v10  ;;  %v908_v12 = vpop.f32.mrb[3].mxu1  ;;  %v1030_v14 = vmax.f32 %v904_v8, 0.0 }
 0x1c6   : > { %v1031_v15 = vmax.f32 %v907_v40, 0.0 }
 0x1c8   : > { %v1062_v16 = vpack.c.bf16 %v1031_v15, %v1030_v14 }
 0x1c9   : > { %v911_v18 = vpop.f32.mrb[4].mxu1 }
 0x1ca   : > { %v912_v21 = vadd.f32 %v2095_v4, %v911_v18  ;;  %v913_v22 = vpop.f32.mrb[5].mxu1  ;;  %1588 = vmatprep.mubr.bf16.mxu0 %v1062_v16 }
 0x1cb   : > { %v914_v25 = vpop.f32.mrb[6].mxu1 }
 0x1cc   : > { %v915_v28 = vadd.f32 %v2095_v4, %v914_v25  ;;  %v916_v29 = vpop.f32.mrb[7].mxu1  ;;  %v1032_v30 = vmax.f32 %v912_v21, 0.0 }
 0x1ce   : > { %v1033_v32 = vmax.f32 %v915_v28, 0.0 }
 0x1d0   : > { %v1063_v34 = vpack.c.bf16 %v1033_v32, %v1032_v30 }
 0x1d1   : > { %v919_v38 = vpop.f32.mrb[8].mxu1 }
 0x1d2   : > { %v920_v41 = vadd.f32 %v2095_v4, %v919_v38  ;;  %v921_v42 = vpop.f32.mrb[9].mxu1  ;;  %1589 = vmatmul.mubr.bf16.vlgmr.msra.gmra.mrb[64].mxu0 %v1063_v34 }
 0x1d3   : > { %v922_v44 = vpop.f32.mrb[10].mxu1 }
 0x1d4   : > { %v923_v48 = vadd.f32 %v2095_v4, %v922_v44  ;;  %v924_v50 = vpop.f32.mrb[11].mxu1  ;;  %v1034_v52 = vmax.f32 %v920_v41, 0.0 }
 0x1d6   : > { %v1035_v53 = vmax.f32 %v923_v48, 0.0 }
 0x1d8   : > { %v1064_v56 = vpack.c.bf16 %v1035_v53, %v1034_v52 }
 0x1d9   : > { %v927_v59 = vpop.f32.mrb[12].mxu1 }
 0x1da   : > { %v928_v60 = vadd.f32 %v2095_v4, %v927_v59  ;;  %v929_v0 = vpop.f32.mrb[13].mxu1  ;;  %1592 = vmatprep.mubr.bf16.mxu0 %v1064_v56 }
 0x1db   : > { %v930_v2 = vpop.f32.mrb[14].mxu1 }
 0x1dc   : > { %v931_v5 = vadd.f32 %v2095_v4, %v930_v2  ;;  %v932_v8 = vpop.f32.mrb[15].mxu1  ;;  %v1036_v39 = vmax.f32 %v928_v60, 0.0 }
 0x1de   : > { %v1037_v10 = vmax.f32 %v931_v5, 0.0 }
 0x1e0   : > { %v1065_v40 = vpack.c.bf16 %v1037_v10, %v1036_v39 }
 0x1e1   : > { %v935_v12 = vpop.f32.mrb[16].mxu1 }
 0x1e2   : > { %v936_v14 = vadd.f32 %v2095_v4, %v935_v12  ;;  %v937_v15 = vpop.f32.mrb[17].mxu1  ;;  %1593 = vmatmul.mubr.bf16.gmra.mrb[68].mxu0 %v1065_v40 }
 0x1e3   : > { %v938_v16 = vpop.f32.mrb[18].mxu1 }
 0x1e4   : > { %v939_v18 = vadd.f32 %v2095_v4, %v938_v16  ;;  %v940_v21 = vpop.f32.mrb[19].mxu1  ;;  %v1038_v22 = vmax.f32 %v936_v14, 0.0 }
 0x1e6   : > { %v1039_v25 = vmax.f32 %v939_v18, 0.0 }
 0x1e8   : > { %v1066_v28 = vpack.c.bf16 %v1039_v25, %v1038_v22 }
 0x1e9   : > { %v943_v29 = vpop.f32.mrb[20].mxu1 }
 0x1ea   : > { %v944_v30 = vadd.f32 %v2095_v4, %v943_v29  ;;  %v945_v32 = vpop.f32.mrb[21].mxu1  ;;  %1596 = vmatprep.mubr.bf16.mxu0 %v1066_v28 }
 0x1eb   : > { %v946_v34 = vpop.f32.mrb[22].mxu1 }
 0x1ec   : > { %v947_v38 = vadd.f32 %v2095_v4, %v946_v34  ;;  %v948_v41 = vpop.f32.mrb[23].mxu1  ;;  %v1040_v42 = vmax.f32 %v944_v30, 0.0 }
 0x1ee   : > { %v1041_v44 = vmax.f32 %v947_v38, 0.0 }
 0x1f0   : > { %v1067_v48 = vpack.c.bf16 %v1041_v44, %v1040_v42 }
 0x1f1   : > { %v951_v50 = vpop.f32.mrb[24].mxu1 }
 0x1f2   : > { %v952_v52 = vadd.f32 %v2095_v4, %v951_v50  ;;  %v953_v53 = vpop.f32.mrb[25].mxu1  ;;  %1597 = vmatmul.mubr.bf16.gmra.mrb[72].mxu0 %v1067_v48 }
 0x1f3   : > { %v954_v56 = vpop.f32.mrb[26].mxu1 }
 0x1f4   : > { %v955_v59 = vadd.f32 %v2095_v4, %v954_v56  ;;  %v956_v60 = vpop.f32.mrb[27].mxu1  ;;  %v1042_v0 = vmax.f32 %v952_v52, 0.0 }
 0x1f6   : > { %v1043_v2 = vmax.f32 %v955_v59, 0.0 }
 0x1f8   : > { %v1068_v5 = vpack.c.bf16 %v1043_v2, %v1042_v0 }
 0x1f9   : > { %v959_v8 = vpop.f32.mrb[28].mxu1 }
 0x1fa   : > { %v960_v39 = vadd.f32 %v2095_v4, %v959_v8  ;;  %v961_v10 = vpop.f32.mrb[29].mxu1  ;;  %1600 = vmatprep.mubr.bf16.mxu0 %v1068_v5 }
 0x1fb   : > { %v962_v40 = vpop.f32.mrb[30].mxu1 }
 0x1fc   : > { %v963_v12 = vadd.f32 %v2095_v4, %v962_v40  ;;  %v964_v14 = vpop.f32.mrb[31].mxu1  ;;  %v1044_v15 = vmax.f32 %v960_v39, 0.0 }
 0x1fe   : > { %v1045_v16 = vmax.f32 %v963_v12, 0.0 }
 0x200   : > { %v1069_v18 = vpack.c.bf16 %v1045_v16, %v1044_v15 }
 0x201   : > { %v967_v21 = vpop.f32.mrb[32].mxu1 }
 0x202   : > { %v968_v22 = vadd.f32 %v2095_v4, %v967_v21  ;;  %v969_v25 = vpop.f32.mrb[33].mxu1  ;;  %1601 = vmatmul.mubr.bf16.gmra.mrb[76].mxu0 %v1069_v18 }
 0x203   : > { %v970_v28 = vpop.f32.mrb[34].mxu1 }
 0x204   : > { %v971_v29 = vadd.f32 %v2095_v4, %v970_v28  ;;  %v972_v30 = vpop.f32.mrb[35].mxu1  ;;  %v1046_v32 = vmax.f32 %v968_v22, 0.0 }
 0x206   : > { %v1047_v34 = vmax.f32 %v971_v29, 0.0 }
 0x208   : > { %v1070_v38 = vpack.c.bf16 %v1047_v34, %v1046_v32 }
 0x209   : > { %v975_v41 = vpop.f32.mrb[36].mxu1 }
 0x20a   : > { %v976_v42 = vadd.f32 %v2095_v4, %v975_v41  ;;  %v977_v44 = vpop.f32.mrb[37].mxu1  ;;  %1604 = vmatprep.mubr.bf16.mxu0 %v1070_v38 }
 0x20b   : > { %v978_v48 = vpop.f32.mrb[38].mxu1 }
 0x20c   : > { %v979_v50 = vadd.f32 %v2095_v4, %v978_v48  ;;  %v980_v52 = vpop.f32.mrb[39].mxu1  ;;  %v1048_v53 = vmax.f32 %v976_v42, 0.0 }
 0x20e   : > { %v1049_v56 = vmax.f32 %v979_v50, 0.0 }
 0x210   : > { %v1071_v59 = vpack.c.bf16 %v1049_v56, %v1048_v53 }
 0x211   : > { %v983_v60 = vpop.f32.mrb[40].mxu1 }
 0x212   : > { %v984_v0 = vadd.f32 %v2095_v4, %v983_v60  ;;  %v985_v2 = vpop.f32.mrb[41].mxu1  ;;  %1605 = vmatmul.mubr.bf16.gmra.mrb[80].mxu0 %v1071_v59 }
 0x213   : > { %v986_v5 = vpop.f32.mrb[42].mxu1 }
 0x214   : > { %v987_v8 = vadd.f32 %v2095_v4, %v986_v5  ;;  %v988_v39 = vpop.f32.mrb[43].mxu1  ;;  %v1050_v10 = vmax.f32 %v984_v0, 0.0 }
 0x216   : > { %v1051_v40 = vmax.f32 %v987_v8, 0.0 }
 0x218   : > { %v1072_v12 = vpack.c.bf16 %v1051_v40, %v1050_v10 }
 0x219   : > { %v991_v14 = vpop.f32.mrb[44].mxu1 }
 0x21a   : > { %v992_v15 = vadd.f32 %v2095_v4, %v991_v14  ;;  %v993_v16 = vpop.f32.mrb[45].mxu1  ;;  %1608 = vmatprep.mubr.bf16.mxu0 %v1072_v12 }
 0x21b   : > { %v994_v18 = vpop.f32.mrb[46].mxu1 }
 0x21c   : > { %v995_v21 = vadd.f32 %v2095_v4, %v994_v18  ;;  %v996_v22 = vpop.f32.mrb[47].mxu1  ;;  %v1052_v25 = vmax.f32 %v992_v15, 0.0 }
 0x21e   : > { %v1053_v28 = vmax.f32 %v995_v21, 0.0 }
 0x220   : > { %v1073_v29 = vpack.c.bf16 %v1053_v28, %v1052_v25 }
 0x221   : > { %v999_v30 = vpop.f32.mrb[48].mxu1 }
 0x222   : > { %v1000_v32 = vadd.f32 %v2095_v4, %v999_v30  ;;  %v1001_v34 = vpop.f32.mrb[49].mxu1  ;;  %1609 = vmatmul.mubr.bf16.gmra.mrb[84].mxu0 %v1073_v29 }
 0x223   : > { %v1002_v38 = vpop.f32.mrb[50].mxu1 }
 0x224   : > { %v1003_v41 = vadd.f32 %v2095_v4, %v1002_v38  ;;  %v1004_v42 = vpop.f32.mrb[51].mxu1  ;;  %v1054_v44 = vmax.f32 %v1000_v32, 0.0 }
 0x226   : > { %v1055_v48 = vmax.f32 %v1003_v41, 0.0 }
 0x228   : > { %v1074_v50 = vpack.c.bf16 %v1055_v48, %v1054_v44 }
 0x229   : > { %v1007_v52 = vpop.f32.mrb[52].mxu1 }
 0x22a   : > { %v1008_v53 = vadd.f32 %v2095_v4, %v1007_v52  ;;  %v1009_v56 = vpop.f32.mrb[53].mxu1  ;;  %1612 = vmatprep.mubr.bf16.mxu0 %v1074_v50 }
 0x22b   : > { %v1010_v59 = vpop.f32.mrb[54].mxu1 }
 0x22c   : > { %v1011_v60 = vadd.f32 %v2095_v4, %v1010_v59  ;;  %v1012_v0 = vpop.f32.mrb[55].mxu1  ;;  %v1056_v2 = vmax.f32 %v1008_v53, 0.0 }
 0x22e   : > { %v1057_v5 = vmax.f32 %v1011_v60, 0.0 }
 0x230   : > { %v1075_v8 = vpack.c.bf16 %v1057_v5, %v1056_v2 }
 0x231   : > { %v1015_v39 = vpop.f32.mrb[56].mxu1 }
 0x232   : > { %v1016_v10 = vadd.f32 %v2095_v4, %v1015_v39  ;;  %v1017_v40 = vpop.f32.mrb[57].mxu1  ;;  %1613 = vmatmul.mubr.bf16.gmra.mrb[88].mxu0 %v1075_v8 }
 0x233   : > { %v1018_v12 = vpop.f32.mrb[58].mxu1 }
 0x234   : > { %v1019_v14 = vadd.f32 %v2095_v4, %v1018_v12  ;;  %v1020_v15 = vpop.f32.mrb[59].mxu1  ;;  %v1058_v16 = vmax.f32 %v1016_v10, 0.0 }
 0x236   : > { %v1059_v18 = vmax.f32 %v1019_v14, 0.0 }
 0x238   : > { %v1076_v21 = vpack.c.bf16 %v1059_v18, %v1058_v16 }
 0x239   : > { %v1023_v22 = vpop.f32.mrb[60].mxu1 }
 0x23a   : > { %v1024_v25 = vadd.f32 %v2095_v4, %v1023_v22  ;;  %v1025_v28 = vpop.f32.mrb[61].mxu1  ;;  %1616 = vmatprep.mubr.bf16.mxu1 %v1076_v21 }
 0x23b   : > { %v1026_v29 = vpop.f32.mrb[62].mxu1 }
 0x23c   : > { %v1027_v30 = vadd.f32 %v2095_v4, %v1026_v29  ;;  %v1028_v32 = vpop.f32.mrb[63].mxu1  ;;  %v1060_v34 = vmax.f32 %v1024_v25, 0.0 }
 0x23e   : > { %v1061_v38 = vmax.f32 %v1027_v30, 0.0 }
 0x240   : > { %v1077_v41 = vpack.c.bf16 %v1061_v38, %v1060_v34 }
 0x242   : > { %1617 = vmatmul.mubr.bf16.vlgmr.msra.gmra.mrb[64].mxu1 %v1077_v41 }
 0x2a5   : > { %v1590_v42 = vpop.f32.mrb[64].mxu0 }
 0x2a6   : > { %v1305_v44 = vadd.f32 %v1590_v42, %v1920_v61  ;;  %v1176_v4 = vpop.f32.mrb[65].mxu0 }
 0x2a7   : > { %v1303_v48 = vadd.f32 %v1176_v4, %v1903_v49  ;;  %v1591_v50 = vpop.f32.mrb[66].mxu0 }
 0x2a8   : > { %1337 = vst [vmem:[%s2133_s10 + $0x10] sm:$0xff] %v1305_v44  ;;  %v1306_v52 = vadd.f32 %v1591_v50, %v1915_v57  ;;  %v1179_v53 = vpop.f32.mrb[67].mxu0 }
 0x2a9   : > { %1335 = vst [vmem:[%s2133_s10] sm:$0xff] %v1303_v48  ;;  %v1304_v56 = vadd.f32 %v1179_v53, %v1898_v45 }
 0x2aa   : > { %1338 = vst [vmem:[%s2133_s10 + $0x18] sm:$0xff] %v1306_v52 }
 0x2ab   : > { %1336 = vst [vmem:[%s2133_s10 + $0x8] sm:$0xff] %v1304_v56 }
 0x2b5   : > { %v1594_v59 = vpop.f32.mrb[68].mxu0 }
 0x2b6   : > { %v1309_v61 = vadd.f32 %v1594_v59, %v1942_v17  ;;  %v1192_v60 = vpop.f32.mrb[69].mxu0 }
 0x2b7   : > { %v1307_v49 = vadd.f32 %v1192_v60, %v1931_v7  ;;  %v1595_v0 = vpop.f32.mrb[70].mxu0 }
 0x2b8   : > { %1341 = vst [vmem:[%s2133_s10 + $0x30] sm:$0xff] %v1309_v61  ;;  %v1310_v57 = vadd.f32 %v1595_v0, %v1937_v13  ;;  %v1195_v2 = vpop.f32.mrb[71].mxu0 }
 0x2b9   : > { %1339 = vst [vmem:[%s2133_s10 + $0x20] sm:$0xff] %v1307_v49  ;;  %v1308_v45 = vadd.f32 %v1195_v2, %v1926_v3 }
 0x2ba   : > { %1342 = vst [vmem:[%s2133_s10 + $0x38] sm:$0xff] %v1310_v57 }
 0x2bb   : > { %1340 = vst [vmem:[%s2133_s10 + $0x28] sm:$0xff] %v1308_v45 }
 0x2c5   : > { %v1598_v5 = vpop.f32.mrb[72].mxu0 }
 0x2c6   : > { %v1313_v17 = vadd.f32 %v1598_v5, %v1964_v37  ;;  %v1208_v8 = vpop.f32.mrb[73].mxu0 }
 0x2c7   : > { %v1311_v7 = vadd.f32 %v1208_v8, %v1953_v27  ;;  %v1599_v39 = vpop.f32.mrb[74].mxu0 }
 0x2c8   : > { %1345 = vst [vmem:[%s2133_s10 + $0x50] sm:$0xff] %v1313_v17  ;;  %v1314_v13 = vadd.f32 %v1599_v39, %v1959_v33  ;;  %v1211_v10 = vpop.f32.mrb[75].mxu0 }
 0x2c9   : > { %1343 = vst [vmem:[%s2133_s10 + $0x40] sm:$0xff] %v1311_v7  ;;  %v1312_v3 = vadd.f32 %v1211_v10, %v1948_v23 }
 0x2ca   : > { %1346 = vst [vmem:[%s2133_s10 + $0x58] sm:$0xff] %v1314_v13 }
 0x2cb   : > { %1344 = vst [vmem:[%s2133_s10 + $0x48] sm:$0xff] %v1312_v3 }
 0x2d5   : > { %v1602_v40 = vpop.f32.mrb[76].mxu0 }
 0x2d6   : > { %v1317_v37 = vadd.f32 %v1602_v40, %v1986_v63  ;;  %v1224_v12 = vpop.f32.mrb[77].mxu0 }
 0x2d7   : > { %v1315_v27 = vadd.f32 %v1224_v12, %v1975_v51  ;;  %v1603_v14 = vpop.f32.mrb[78].mxu0 }
 0x2d8   : > { %1349 = vst [vmem:[%s2133_s10 + $0x70] sm:$0xff] %v1317_v37  ;;  %v1318_v33 = vadd.f32 %v1603_v14, %v1981_v58  ;;  %v1227_v15 = vpop.f32.mrb[79].mxu0 }
 0x2d9   : > { %1347 = vst [vmem:[%s2133_s10 + $0x60] sm:$0xff] %v1315_v27  ;;  %v1316_v23 = vadd.f32 %v1227_v15, %v1970_v46 }
 0x2da   : > { %1350 = vst [vmem:[%s2133_s10 + $0x78] sm:$0xff] %v1318_v33 }
 0x2db   : > { %1348 = vst [vmem:[%s2133_s10 + $0x68] sm:$0xff] %v1316_v23 }
 0x2e5   : > { %v1606_v16 = vpop.f32.mrb[80].mxu0 }
 0x2e6   : > { %v1321_v63 = vadd.f32 %v1606_v16, %v2008_v24  ;;  %v1240_v18 = vpop.f32.mrb[81].mxu0 }
 0x2e7   : > { %v1319_v51 = vadd.f32 %v1240_v18, %v1997_v11  ;;  %v1607_v21 = vpop.f32.mrb[82].mxu0 }
 0x2e8   : > { %1353 = vst [vmem:[%s2133_s10 + $0x90] sm:$0xff] %v1321_v63  ;;  %v1322_v58 = vadd.f32 %v1607_v21, %v2003_v19  ;;  %v1243_v22 = vpop.f32.mrb[83].mxu0 }
 0x2e9   : > { %1351 = vst [vmem:[%s2133_s10 + $0x80] sm:$0xff] %v1319_v51  ;;  %v1320_v46 = vadd.f32 %v1243_v22, %v1992_v6 }
 0x2ea   : > { %1354 = vst [vmem:[%s2133_s10 + $0x98] sm:$0xff] %v1322_v58 }
 0x2eb   : > { %1352 = vst [vmem:[%s2133_s10 + $0x88] sm:$0xff] %v1320_v46 }
 0x2f5   : > { %v1610_v25 = vpop.f32.mrb[84].mxu0 }
 0x2f6   : > { %v1325_v24 = vadd.f32 %v1610_v25, %v2033_v54  ;;  %v1256_v28 = vpop.f32.mrb[85].mxu0 }
 0x2f7   : > { %v1323_v11 = vadd.f32 %v1256_v28, %v2019_v36  ;;  %v1611_v29 = vpop.f32.mrb[86].mxu0 }
 0x2f8   : > { %1357 = vst [vmem:[%s2133_s10 + $0xb0] sm:$0xff] %v1325_v24  ;;  %v1326_v19 = vadd.f32 %v1611_v29, %v2025_v47  ;;  %v1259_v30 = vpop.f32.mrb[87].mxu0 }
 0x2f9   : > { %1355 = vst [vmem:[%s2133_s10 + $0xa0] sm:$0xff] %v1323_v11  ;;  %v1324_v6 = vadd.f32 %v1259_v30, %v2014_v31 }
 0x2fa   : > { %1358 = vst [vmem:[%s2133_s10 + $0xb8] sm:$0xff] %v1326_v19 }
 0x2fb   : > { %1356 = vst [vmem:[%s2133_s10 + $0xa8] sm:$0xff] %v1324_v6 }
 0x305   : > { %v1614_v32 = vpop.f32.mrb[88].mxu0 }
 0x306   : > { %v1329_v54 = vadd.f32 %v1614_v32, %v2064_v26  ;;  %v1272_v34 = vpop.f32.mrb[89].mxu0 }
 0x307   : > { %v1327_v36 = vadd.f32 %v1272_v34, %v2050_v9  ;;  %v1615_v38 = vpop.f32.mrb[90].mxu0 }
 0x308   : > { %1361 = vst [vmem:[%s2133_s10 + $0xd0] sm:$0xff] %v1329_v54  ;;  %v1330_v47 = vadd.f32 %v1615_v38, %v2059_v20  ;;  %v1275_v41 = vpop.f32.mrb[91].mxu0 }
 0x309   : > { %1359 = vst [vmem:[%s2133_s10 + $0xc0] sm:$0xff] %v1327_v36  ;;  %v1328_v31 = vadd.f32 %v1275_v41, %v2042_v1 }
 0x30a   : > { %1362 = vst [vmem:[%s2133_s10 + $0xd8] sm:$0xff] %v1330_v47 }
 0x30b   : > { %1360 = vst [vmem:[%s2133_s10 + $0xc8] sm:$0xff] %v1328_v31 }
 0x315   : > { %v1618_v42 = vpop.f32.mrb[64].mxu1 }
 0x316   : > { %v1333_v26 = vadd.f32 %v1618_v42, %v2086_v62  ;;  %v1288_v44 = vpop.f32.mrb[65].mxu1 }
 0x317   : > { %v1331_v4 = vadd.f32 %v1288_v44, %v2075_v43  ;;  %v1619_v9 = vpop.f32.mrb[66].mxu1 }
 0x318   : > { %1365 = vst [vmem:[%s2133_s10 + $0xf0] sm:$0xff] %v1333_v26  ;;  %v1334_v48 = vadd.f32 %v1619_v9, %v2081_v55  ;;  %v1291_v50 = vpop.f32.mrb[67].mxu1 }
 0x319   : > { %1363 = vst [vmem:[%s2133_s10 + $0xe0] sm:$0xff] %v1331_v4  ;;  %v1332_v20 = vadd.f32 %v1291_v50, %v2070_v35 }
 0x31a   : > { %1366 = vst [vmem:[%s2133_s10 + $0xf8] sm:$0xff] %v1334_v48 }
 0x31b   : > { %1364 = vst [vmem:[%s2133_s10 + $0xe8] sm:$0xff] %v1332_v20 }
 0x31c PF: > { %s16_s23 = sadd.s32 1, %s1721_s23   ;;  %s2215_s21 = smov %s1717_s22 }
 0x31d   : > { %p13_p5 = scmp.ge.s32.totalorder %s16_s23, 4   ;;  %s2216_s22 = smov %s2218_s24 }
 0x31f   :  { %15 = sbr.rel (!%p13_p5) target bundleno = 2 (0x2), region = 77 }

</bundles_post_ra>
